<compile_context>
chip_gen: v6e
topology: v6e:2x2x1
jax: 0.10.0
libtpu: 0.0.40
codegen_flags: <defaults>
</compile_context>

<pallas_src>
import math

import jax
import jax.numpy as jnp
from jax.experimental import pallas as pl
from jax.experimental.pallas import tpu as pltpu


def _round_up(n, m):
    return ((n + m - 1) // m) * m


def make_linear_policy_kernel(num_actions, activation):
    """Kernel closure computing activation((x @ W_pad)[:, :A] + b)."""

    def kernel(x_ref, wt_ref, b_ref, o_ref):
        # x_ref : (TB, F)      batch tile
        # wt_ref: (F, A_pad)   pre-transposed, lane-padded weights (VMEM-resident)
        # b_ref : (1, A)       bias at real width (VMEM-resident)
        # o_ref : (TB, A)      output tile at its REAL width (no HBM write ampl.)
        scores = jnp.dot(x_ref[...], wt_ref[...],
                         preferred_element_type=jnp.float32)
        # Drop the padded lanes before bias/activation/store.
        scores = scores[:, :num_actions] + b_ref[...]
        # NOTE: default f32 MXU precision is not bit-identical to fp32 nn.Linear;
        # pass precision=jax.lax.Precision.HIGHEST in jnp.dot if bit-closeness
        # matters (free here -- the kernel is HBM-bound, not MXU-bound).
        o_ref[...] = activation(scores).astype(o_ref.dtype)

    return kernel


def pack_params(w, b, *, lane=128):
    """Pack nn.Linear parameters ONCE per parameter update (hoisted out of the
    per-forward path, per review).

    w: (num_actions, feature_size)  ->  wt: (feature_size, A_pad) lane-padded W^T
    b: (num_actions,)               ->  b2: (1, num_actions)
    """
    num_actions, feat = w.shape
    a_pad = _round_up(max(num_actions, 1), lane)
    wt = jnp.zeros((feat, a_pad), jnp.float32).at[:, :num_actions].set(
        w.astype(jnp.float32).T)
    b2 = b.astype(jnp.float32).reshape(1, num_actions)
    return wt, b2


def _cost_estimate(batch, feat, a_pad, num_actions, out_dtype):
    return pl.CostEstimate(
        flops=2 * batch * feat * a_pad,
        transcendentals=batch * num_actions,
        bytes_accessed=(4 * (batch * feat + feat * a_pad + num_actions)
                        + batch * num_actions * jnp.dtype(out_dtype).itemsize),
    )


def _choose_tb(batch, feat, num_actions, a_pad, tb_cap, vmem_budget_bytes):
    # Lane-padded per-row VMEM footprint of one grid step (f32):
    #   x tile  : round_up(F, 128)*4 B, double-buffered
    #   out tile: round_up(A, 128)*4 B, double-buffered (VMEM lane-pads the
    #             buffer even though only A lanes go to HBM)
    #   matmul / activation intermediates: ~2 * a_pad * 4 B
    row_bytes = 4 * (2 * _round_up(feat, 128)
                     + 2 * _round_up(num_actions, 128)
                     + 2 * a_pad)
    tb = max(8, (vmem_budget_bytes // row_bytes) // 8 * 8)
    tb = min(tb, _round_up(tb_cap, 8))
    # Keep >=2 grid steps so "parallel" semantics can shard the batch across
    # both v7x TensorCores (no-op on 1-TC v5e/v6e).
    tb = min(tb, max(8, _round_up((batch + 1) // 2, 8)))
    return tb


def linear_fa_policy_forward(x, wt, b2, *, activation=jnp.tanh, out_dtype=None,
                             small_batch_max=512, tb_cap=8192,
                             vmem_budget_bytes=24 << 20):
    """Pallas forward: activation(x @ W^T + b).

    x  : (batch, feature_size) f32
    wt : (feature_size, A_pad) f32   -- lane-padded W^T from pack_params()
    b2 : (1, num_actions)     f32    -- bias from pack_params()
    """
    batch, feat = x.shape
    num_actions = b2.shape[1]
    a_pad = wt.shape[1]
    out_dtype = x.dtype if out_dtype is None else out_dtype
    kernel = make_linear_policy_kernel(num_actions, activation)

    if batch <= small_batch_max:
        # --- Small batch (RL inference path): one grid point, whole-ref VMEM,
        #     no pipelining machinery. ---
        batch8 = _round_up(batch, 8)
        x_in = x
        if batch8 != batch:  # cheap: only on the tiny path
            x_in = jnp.zeros((batch8, feat), x.dtype).at[:batch].set(x)
        out = pl.pallas_call(
            kernel,
            out_shape=jax.ShapeDtypeStruct((batch8, num_actions), out_dtype),
            in_specs=[pl.BlockSpec(memory_space=pltpu.MemorySpace.VMEM)] * 3,
            out_specs=pl.BlockSpec(memory_space=pltpu.MemorySpace.VMEM),
            cost_estimate=_cost_estimate(batch8, feat, a_pad, num_actions,
                                         out_dtype),
        )(x_in, wt, b2)
        return out if batch8 == batch else out[:batch]

    # --- Large batch: 1-D batch grid; ragged final block masked by Pallas
    #     (no wrapper-side padding / extra HBM pass over x). ---
    tb = _choose_tb(batch, feat, num_actions, a_pad, tb_cap, vmem_budget_bytes)
    grid = (pl.cdiv(batch, tb),)
    out = pl.pallas_call(
        kernel,
        out_shape=jax.ShapeDtypeStruct((batch, num_actions), out_dtype),
        grid_spec=pltpu.PrefetchScalarGridSpec(
            num_scalar_prefetch=0,
            grid=grid,
            in_specs=[
                pl.BlockSpec((tb, feat), lambda i: (i, 0)),        # x tile
                pl.BlockSpec((feat, a_pad), lambda i: (0, 0)),     # W^T resident
                pl.BlockSpec((1, num_actions), lambda i: (0, 0)),  # bias resident
            ],
            out_specs=pl.BlockSpec((tb, num_actions), lambda i: (i, 0)),
        ),
        compiler_params=pltpu.CompilerParams(
            dimension_semantics=("parallel",),
            vmem_limit_bytes=32 * 1024 * 1024,
        ),
        cost_estimate=_cost_estimate(batch, feat, a_pad, num_actions, out_dtype),
    )(x, wt, b2)
    return out


def reference_forward(x, w, b, activation=jnp.tanh):
    return activation(x.astype(jnp.float32) @ w.astype(jnp.float32).T + b[None, :])


if __name__ == "__main__":
    # Shapes implied by set_params(): poly_degree=3, state_size=2 -> F=16; A=4.
    poly_degree = 3
    state_size = 2
    feature_size = (poly_degree + 1) ** state_size   # 16
    num_actions = 4

    key = jax.random.PRNGKey(0)
    kx, kw, kb, kx2 = jax.random.split(key, 4)

    # nn.Linear-style init: uniform in [-1/sqrt(fan_in), 1/sqrt(fan_in)].
    bound = 1.0 / math.sqrt(feature_size)
    w = jax.random.uniform(kw, (num_actions, feature_size),
                           minval=-bound, maxval=bound, dtype=jnp.float32)
    b = jax.random.uniform(kb, (num_actions,),
                           minval=-bound, maxval=bound, dtype=jnp.float32)

    # Pack once per parameter update (hoisted out of the per-forward path).
    wt, b2 = pack_params(w, b)

    # Small batch -> single-block whole-ref VMEM path.
    batch = 8
    x = jax.random.normal(kx, (batch, feature_size), dtype=jnp.float32)
    out = jax.block_until_ready(linear_fa_policy_forward(x, wt, b2))
    ref = reference_forward(x, w, b)
    assert out.shape == (batch, num_actions)
    assert jnp.allclose(out, ref, atol=1e-5, rtol=1e-5), "small-batch mismatch"

    # select_action-style single-row call (non-multiple-of-8 batch).
    out1 = jax.block_until_ready(linear_fa_policy_forward(x[:1], wt, b2))
    assert out1.shape == (1, num_actions)
    assert jnp.allclose(out1, ref[:1], atol=1e-5, rtol=1e-5), "batch-1 mismatch"

    # Larger, non-tile-multiple batch -> tiled parallel-grid path with a ragged
    # final block (no wrapper-side padding of x, exact-width output).
    big_batch = 520
    xb = jax.random.normal(kx2, (big_batch, feature_size), dtype=jnp.float32)
    outb = jax.block_until_ready(
        linear_fa_policy_forward(xb, wt, b2, tb_cap=256))
    refb = reference_forward(xb, w, b)
    assert outb.shape == (big_batch, num_actions)
    assert jnp.allclose(outb, refb, atol=1e-5, rtol=1e-5), "tiled-batch mismatch"

    # Optional bf16 output (memory-bound win on v6e/v7x; keep f32 on v5e).
    outb16 = jax.block_until_ready(
        linear_fa_policy_forward(xb, wt, b2, tb_cap=256,
                                 out_dtype=jnp.bfloat16))
    assert outb16.dtype == jnp.bfloat16
    assert jnp.allclose(outb16.astype(jnp.float32), refb, atol=2e-2), "bf16 mismatch"

    # TODO(synk): select_action's sample_func / log-prob bookkeeping is stateful
    # Python outside forward(); not part of the kernel.
    print("KERNEL_OK")
</pallas_src>

<mosaic_0001>
module attributes {stable_mosaic.version = 11 : i64} {
  func.func @kernel(%arg0: memref<8x16xf32, #tpu.memory_space<vmem>>, %arg1: memref<16x128xf32, #tpu.memory_space<vmem>>, %arg2: memref<1x4xf32, #tpu.memory_space<vmem>>, %arg3: memref<8x4xf32, #tpu.memory_space<vmem>>) attributes {dimension_semantics = [], scalar_prefetch = 0 : i64, scratch_operands = 0 : i64, tpu.core_type = #tpu.core_type<tc>} {
    %c0 = arith.constant 0 : index
    %c0_0 = arith.constant 0 : index
    %0 = vector.load %arg0[%c0, %c0_0] : memref<8x16xf32, #tpu.memory_space<vmem>>, vector<8x16xf32>
    %c0_1 = arith.constant 0 : index
    %c0_2 = arith.constant 0 : index
    %1 = vector.load %arg1[%c0_1, %c0_2] : memref<16x128xf32, #tpu.memory_space<vmem>>, vector<16x128xf32>
    %cst = arith.constant dense<0.000000e+00> : vector<8x128xf32>
    %2 = tpu.matmul %0, %1, %cst {dimension_numbers = #tpu.dot_dimension_numbers<[1], [0], [0], [1], [0, 0, 1, 1], [], []>} : vector<8x16xf32>, vector<16x128xf32>, vector<8x128xf32> -> vector<8x128xf32>
    %3 = vector.extract_strided_slice %2 {offsets = [0, 0], sizes = [8, 4], strides = [1, 1]} : vector<8x128xf32> to vector<8x4xf32>
    %c0_3 = arith.constant 0 : index
    %c0_4 = arith.constant 0 : index
    %4 = vector.load %arg2[%c0_3, %c0_4] : memref<1x4xf32, #tpu.memory_space<vmem>>, vector<1x4xf32>
    %5 = vector.broadcast %4 : vector<1x4xf32> to vector<8x4xf32>
    %6 = arith.addf %3, %5 : vector<8x4xf32>
    %7 = math.tanh %6 : vector<8x4xf32>
    %c0_5 = arith.constant 0 : index
    %c0_6 = arith.constant 0 : index
    %8 = vector.load %arg3[%c0_5, %c0_6] : memref<8x4xf32, #tpu.memory_space<vmem>>, vector<8x4xf32>
    tpu.vector_store %arg3[%c0_5, %c0_6], %7 {strides = array<i32>} : memref<8x4xf32, #tpu.memory_space<vmem>>, vector<8x4xf32>,
    return
  }
}

</mosaic_0001>

<bundles_post_ra>
// kernel: tpu_custom_call.1
= control target key start
LH: loop header
LB: loop body
LE: loop exit
PB: predicated region body
PF: predicated region fallthrough
CT: control target
= control target key end

     0   :  { %8 = vsyncpa [#allocation3], 0  ;;  %s236_s0 = inlined_call_operand.hbm [shape: f32[8,16], index: 0, kind: input, shape index: {}]   ;;  %s237_s1 = inlined_call_operand.hbm [shape: f32[16,128], index: 1, kind: input, shape index: {}]   ;;  %s238_s2 = inlined_call_operand.vmem [shape: f32[1,4], index: 2, kind: input, shape index: {}]   ;;  %s239_s3 = inlined_call_operand.vmem [shape: f32[8,4], index: 3, kind: output, shape index: {}]  }
   0x1   :  { %9 = vsyncpa [#allocation5], 0  ;;  %s198_s12 = smov [#allocation2]   ;;  %s199_s14 = smov [#allocation4]  }
   0x2   :  { %s16_s13 = sshll.u32 %s198_s12, 4  ;;  %s25_s15 = sshll.u32 %s199_s14, 4  ;;  %s17_s13 = int_to_ptr.vmem [resolvable:$true] %s16_s13  ;;  %s26_s15 = int_to_ptr.vmem [resolvable:$true] %s25_s15 }
   0x3   :  { %s162_s16 = scalar_lea.vmem %s17_s13, 128  ;;  %p167_p1 = scmp.lt.s32.totalorder %s17_s13, %s17_s13 }
   0x4   :  { %p163_p0 = scmp.ne.s32.totalorder %s17_s13, %s162_s16  ;;  %p168_p2 = scmp.lt.s32.totalorder %s162_s16, %s162_s16 }
   0x6   :  { %p169_p3 = por %p168_p2, %p167_p1 }
   0x8   :  { %p170_p4 = pnand %p169_p3, %p163_p0 }
   0xa   :  { %173 = shalt.err (!%p170_p4)
}
   0xb   :  { %19 = dma.hbm_to_vmem [thread:$0]  %s236_s0, 128, %s17_s13, [#allocation3]  }
   0xc   :  { %s182_s19 = scalar_lea.vmem %s26_s15, 256  ;;  %p187_p6 = scmp.lt.s32.totalorder %s26_s15, %s26_s15 }
   0xd   :  { %p183_p5 = scmp.ne.s32.totalorder %s26_s15, %s182_s19  ;;  %p188_p7 = scmp.lt.s32.totalorder %s182_s19, %s182_s19 }
   0xf   :  { %p189_p8 = por %p188_p7, %p187_p6 }
  0x11   :  { %p190_p9 = pnand %p189_p8, %p183_p5 }
  0x13   :  { %193 = shalt.err (!%p190_p9)
}
  0x14   :  { %s200_s20 = smov 128   ;;  %s201_s21 = smov 8  }
  0x15   :  { %31 = dma.hbm_to_vmem [thread:$0]  %s237_s1, 256, %s26_s15, [#allocation5], %s200_s20, %s200_s20, %s201_s21  }
  0x16   :  { %194 = dma.done.wait [#allocation3], 128  }
  0x17   :  { %195 = vsyncadd [#allocation3], 4294967168 }
  0x18   :  { %196 = dma.done.wait [#allocation5], 256  }
  0x19   :  { %197 = vsyncadd [#allocation5], 4294967040  ;;  %v202_v0 = vmov 0.0   ;;  %vm203_vm0 = vmmov 0   ;;  %v42_v1 = vld [vmem:[#allocation4 + $0x8] sm:$0xff]  ;;  %v41_v2 = vld [vmem:[#allocation4] sm:$0xff] }
  0x1a   :  { %139 = vmatprep.subr.mxu0 %v202_v0  ;;  %143 = vmatprep.mubr.msk.f32.mxu0 %vm203_vm0, %v202_v0  ;;  %v40_v3 = vld [vmem:[#allocation2] sm:$0xff]  ;;  %vm43_vm1 = vcmask 130048   ;;  %vm126_vm2 = vcmask 31744  }
  0x1b   :  { %140 = vmatpush3.msra.mxu0 %v42_v1  ;;  %v135_v4 = vld [vmem:[%s238_s2] ss:$0 sm:$0xff] }
  0x1c   :  { %141 = vmatprep.subr.mxu0 %v202_v0 }
  0x1d   :  { %142 = vmatpush3.msra.mxu0 %v41_v2 }
  0x1e   :  { %144 = vmatmul.mubr.msk.f32.vlgmr.msra.gmra.mxu0 %vm43_vm1, %v40_v3 }
  0xde   :  { %v113_v5 = vpop.f32.mrf.mxu0 }
  0xdf   :  { %v124_v6 = vadd.f32 %v135_v4, %v113_v5 }
  0xe0   :  { %v145_v7 = vpop.f32.mrf.mxu0 }
  0xe1   :  { %152 = vtanh.f32 %v124_v6 }
  0xee   :  { %v153_v8 = vpop.eup %152 }
  0xef   :  { %127 = vst.msk [vmem:[%s239_s3] sm:$0xff] %vm126_vm2, %v153_v8 }
  0xf0   :  { %132 = vsyncpa [#allocation3], 1 }
  0xf1   :  { %133 = vsyncpa [#allocation5], 1 }

</bundles_post_ra>
